<compile_context>
chip_gen: v7x
topology: tpu7x:2x2x1
jax: 0.10.0
libtpu: 0.0.40
codegen_flags: <defaults>
</compile_context>

<pallas_src>
import functools

import jax
import jax.numpy as jnp
from jax.experimental import pallas as pl
from jax.experimental.pallas import tpu as pltpu


def _distill_loss_kernel(
    i_blk_ref, j_blk_ref,                          # scalar prefetch (SMEM)
    t_row_ref, t_col_ref, f_row_ref, f_col_ref,    # (tb, dk) feature tiles
    t_inv_c_ref, t_inv_r_ref,                      # (tb,1)/(1,tb) 1/||row||
    f_inv_c_ref, f_inv_r_ref,
    cam_c_ref, cam_r_ref,                          # (tb,1)/(1,tb) camera ids
    out_ref,                                       # (1, 8, 128) partial sums
    gt_acc, gf_acc,                                # (tb, tb) f32 gram scratch
    *, tile):
    t = pl.program_id(0)
    k = pl.program_id(1)
    nk = pl.num_programs(1)

    @pl.when(k == 0)
    def _init():
        gt_acc[...] = jnp.zeros_like(gt_acc)
        gf_acc[...] = jnp.zeros_like(gf_acc)

    # Contract the LAST dim of both operands: no transpose in front of the MXU,
    # raw input dtype in, f32 accumulation out.
    dn = (((1,), (1,)), ((), ()))
    gt_acc[...] += jax.lax.dot_general(t_row_ref[...], t_col_ref[...], dn,
                                       preferred_element_type=jnp.float32)
    gf_acc[...] += jax.lax.dot_general(f_row_ref[...], f_col_ref[...], dn,
                                       preferred_element_type=jnp.float32)

    @pl.when(k == nk - 1)
    def _finalize():
        i_blk = i_blk_ref[t]
        j_blk = j_blk_ref[t]
        is_diag = i_blk == j_blk

        def dist_from_gram(gram, inv_c, inv_r):
            # For unit-norm rows ||a-b||^2 = 2 - 2<a,b>; normalization folded in.
            gram_n = gram * inv_c * inv_r
            d2 = jnp.maximum(2.0 - 2.0 * gram_n, 0.0)
            return jnp.sqrt(d2 + 1e-12)

        t_dist = dist_from_gram(gt_acc[...], t_inv_c_ref[...], t_inv_r_ref[...])
        s_dist = dist_from_gram(gf_acc[...], f_inv_c_ref[...], f_inv_r_ref[...])

        # Same-camera mask; the global diagonal only exists on diagonal tiles,
        # where it coincides with the local diagonal.  Single boolean select.
        same_cam = cam_c_ref[...] == cam_r_ref[...]
        rid = jax.lax.broadcasted_iota(jnp.int32, (tile, tile), 0)
        cid = jax.lax.broadcasted_iota(jnp.int32, (tile, tile), 1)
        keep = jnp.logical_and(
            same_cam, jnp.logical_not(jnp.logical_and(is_diag, rid == cid)))
        diff = jnp.where(keep, t_dist - s_dist, 0.0)
        d = diff * diff

        # Off-diagonal tiles count for both (i,j) and (j,i) of the symmetric sum.
        weight = jnp.where(is_diag, 1.0, 2.0).astype(jnp.float32)

        if tile % 128 == 0:
            # Two-stage, vreg-aligned partial reduction -> one (8,128) vreg.
            d8 = d[0:8, :]
            for r in range(1, tile // 8):
                d8 = d8 + d[r * 8:(r + 1) * 8, :]
            part = d8[:, 0:128]
            for c in range(1, tile // 128):
                part = part + d8[:, c * 128:(c + 1) * 128]
            out_ref[0] = part * weight
        else:
            # Small / irregular single-tile fallback: scalar reduce.
            total = jnp.sum(d) * weight
            r8 = jax.lax.broadcasted_iota(jnp.int32, (8, 128), 0)
            c8 = jax.lax.broadcasted_iota(jnp.int32, (8, 128), 1)
            out_ref[0] = jnp.where(jnp.logical_and(r8 == 0, c8 == 0), total, 0.0)


def _pick_block_b(b):
    # 256 fills the v6e/v7x 2x256^2 MXU and fits v7x's 64 MiB VMEM; 128 is fine
    # on v5e.  (512 only pays on v5e/v6e -- pass block_b explicitly there.)
    for cand in (256, 128):
        if b % cand == 0:
            return cand
    return b


def _pick_block_d(d):
    if d <= 1024:
        return d
    for cand in (1024, 512, 256, 128):
        if d % cand == 0:
            return cand
    return d  # TODO(synk): pad D for large feature dims with no 128-divisor.


def distill_loss(t_feat, feat, cams, *, block_b=None, block_d=None):
    """Pallas TPU forward of DistillLoss.  t_feat, feat: (B, D); cams: (B,)."""
    b, d = feat.shape
    assert t_feat.shape == (b, d) and cams.shape[0] == b

    tb = block_b if block_b is not None else _pick_block_b(b)
    dk = block_d if block_d is not None else _pick_block_d(d)
    assert b % tb == 0 and (tb == b or tb % 128 == 0), (b, tb)
    assert d % dk == 0 and (dk == d or dk % 128 == 0), (d, dk)

    n = b // tb
    nk = d // dk

    # Upper-triangular tile enumeration, i-ordered so row blocks stay resident.
    i_list, j_list = [], []
    for i in range(n):
        for j in range(i, n):
            i_list.append(i)
            j_list.append(j)
    num_steps = len(i_list)
    i_blk = jnp.asarray(i_list, dtype=jnp.int32)
    j_blk = jnp.asarray(j_list, dtype=jnp.int32)

    # Inverse row norms precomputed once (f32, eps-clamped so zero rows don't
    # produce inf/NaN).
    def inv_norms(x):
        s = jnp.sum(x.astype(jnp.float32) ** 2, axis=1)
        return jax.lax.rsqrt(jnp.maximum(s, 1e-24))

    t_inv = inv_norms(t_feat)
    f_inv = inv_norms(feat)
    t_inv_col, t_inv_row = t_inv.reshape(b, 1), t_inv.reshape(1, b)
    f_inv_col, f_inv_row = f_inv.reshape(b, 1), f_inv.reshape(1, b)
    cams_col = cams.reshape(b, 1).astype(jnp.int32)
    cams_row = cams.reshape(1, b).astype(jnp.int32)

    # VMEM budget: double-buffered feature tiles (4 operands), two (tb,tb) f32
    # gram scratch buffers, plus (tb,tb) f32 temporaries in the finalize step.
    itemsize = max(jnp.dtype(t_feat.dtype).itemsize, jnp.dtype(feat.dtype).itemsize)
    est = 2 * 4 * tb * dk * itemsize + 14 * tb * tb * 4 + (4 << 20)
    try:
        cap = int(0.85 * pltpu.get_tpu_info().vmem_capacity_bytes)
    except Exception:
        cap = 54 * 2**20  # conservative: ~85% of v7x's 64 MiB per TensorCore
    vmem_limit = int(min(cap, max(32 * 2**20, est)))

    kernel = functools.partial(_distill_loss_kernel, tile=tb)

    partials = pl.pallas_call(
        kernel,
        out_shape=jax.ShapeDtypeStruct((num_steps, 8, 128), jnp.float32),
        grid_spec=pltpu.PrefetchScalarGridSpec(
            num_scalar_prefetch=2,
            grid=(num_steps, nk),
            in_specs=[
                pl.BlockSpec((tb, dk), lambda t, k, ib, jb: (ib[t], k)),  # t row
                pl.BlockSpec((tb, dk), lambda t, k, ib, jb: (jb[t], k)),  # t col
                pl.BlockSpec((tb, dk), lambda t, k, ib, jb: (ib[t], k)),  # f row
                pl.BlockSpec((tb, dk), lambda t, k, ib, jb: (jb[t], k)),  # f col
                pl.BlockSpec((tb, 1), lambda t, k, ib, jb: (ib[t], 0)),   # 1/|t| col
                pl.BlockSpec((1, tb), lambda t, k, ib, jb: (0, jb[t])),   # 1/|t| row
                pl.BlockSpec((tb, 1), lambda t, k, ib, jb: (ib[t], 0)),   # 1/|f| col
                pl.BlockSpec((1, tb), lambda t, k, ib, jb: (0, jb[t])),   # 1/|f| row
                pl.BlockSpec((tb, 1), lambda t, k, ib, jb: (ib[t], 0)),   # cams col
                pl.BlockSpec((1, tb), lambda t, k, ib, jb: (0, jb[t])),   # cams row
            ],
            out_specs=pl.BlockSpec((1, 8, 128), lambda t, k, ib, jb: (t, 0, 0)),
            scratch_shapes=[pltpu.VMEM((tb, tb), jnp.float32),
                            pltpu.VMEM((tb, tb), jnp.float32)],
        ),
        compiler_params=pltpu.CompilerParams(
            # Tile axis writes a unique output block per step -> parallel
            # (v7x megacore); K axis accumulates into scratch -> arbitrary.
            dimension_semantics=("parallel", "arbitrary"),
            vmem_limit_bytes=vmem_limit,
        ),
    )(i_blk, j_blk, t_feat, t_feat, feat, feat,
      t_inv_col, t_inv_row, f_inv_col, f_inv_row, cams_col, cams_row)

    # ||diff||_F / B from the tiny per-tile partial sums.
    return jnp.sqrt(jnp.sum(partials)) / b


def _reference_loss(t_feat, feat, cams):
    # Pure-JAX reference mirroring the PyTorch code (broadcast-subtract cdist).
    t_feat = t_feat / jnp.linalg.norm(t_feat, axis=1, keepdims=True)
    feat = feat / jnp.linalg.norm(feat, axis=1, keepdims=True)

    def cdist(a, bb):
        dlt = a[:, None, :] - bb[None, :, :]
        return jnp.sqrt(jnp.sum(dlt * dlt, axis=2) + 1e-12)

    t_dist = cdist(t_feat, t_feat)
    dist = cdist(feat, feat)
    mask = (cams[:, None] == cams[None, :]).astype(jnp.float32)
    mask = mask * (1.0 - jnp.eye(feat.shape[0], dtype=jnp.float32))
    diff = (t_dist - dist) * mask
    return jnp.linalg.norm(diff) / feat.shape[0]


if __name__ == "__main__":
    key = jax.random.PRNGKey(0)
    k1, k2, k3, k4, k5 = jax.random.split(key, 5)

    # Primary small test (B=8, D=32) -> single tile, scalar-reduce fallback.
    B, D = 8, 32
    t_feat = jax.random.normal(k1, (B, D), dtype=jnp.float32)
    feat = jax.random.normal(k2, (B, D), dtype=jnp.float32)
    cams = jnp.array([0, 1, 0, 1, 2, 2, 0, 1], dtype=jnp.int32)

    loss = jax.block_until_ready(distill_loss(t_feat, feat, cams))
    ref = _reference_loss(t_feat, feat, cams)
    assert jnp.allclose(loss, ref, rtol=1e-4, atol=1e-5), (loss, ref)

    # Secondary test: triangular multi-tile path (2x2 row/col tiles -> 3 steps)
    # plus K-tiled gram accumulation (D split into 2 blocks).
    B2, D2 = 256, 256
    t_feat2 = jax.random.normal(k3, (B2, D2), dtype=jnp.float32)
    feat2 = jax.random.normal(k4, (B2, D2), dtype=jnp.float32)
    cams2 = jax.random.randint(k5, (B2,), 0, 6, dtype=jnp.int32)

    loss2 = jax.block_until_ready(
        distill_loss(t_feat2, feat2, cams2, block_b=128, block_d=128))
    ref2 = _reference_loss(t_feat2, feat2, cams2)
    assert jnp.allclose(loss2, ref2, rtol=2e-4, atol=1e-5), (loss2, ref2)

    print("KERNEL_OK")
</pallas_src>

<mosaic_0001>
module attributes {stable_mosaic.version = 11 : i64} {
  func.func @_distill_loss_kernel(%arg0: i32, %arg1: i32, %arg2: memref<1xi32, #tpu.memory_space<smem>>, %arg3: memref<1xi32, #tpu.memory_space<smem>>, %arg4: memref<8x32xf32, #tpu.memory_space<vmem>>, %arg5: memref<8x32xf32, #tpu.memory_space<vmem>>, %arg6: memref<8x32xf32, #tpu.memory_space<vmem>>, %arg7: memref<8x32xf32, #tpu.memory_space<vmem>>, %arg8: memref<8x1xf32, #tpu.memory_space<vmem>>, %arg9: memref<1x8xf32, #tpu.memory_space<vmem>>, %arg10: memref<8x1xf32, #tpu.memory_space<vmem>>, %arg11: memref<1x8xf32, #tpu.memory_space<vmem>>, %arg12: memref<8x1xi32, #tpu.memory_space<vmem>>, %arg13: memref<1x8xi32, #tpu.memory_space<vmem>>, %arg14: memref<1x8x128xf32, #tpu.memory_space<vmem>>, %arg15: memref<8x8xf32, #tpu.memory_space<vmem>>, %arg16: memref<8x8xf32, #tpu.memory_space<vmem>>) attributes {dimension_semantics = [#tpu.dimension_semantics<parallel>, #tpu.dimension_semantics<arbitrary>], iteration_bounds = array<i64: 1, 1>, scalar_prefetch = 2 : i64, scratch_operands = 2 : i64, tpu.core_type = #tpu.core_type<tc>, window_params = [{transform_indices = @transform_0, window_bounds = array<i64: 8, 32>}, {transform_indices = @transform_1, window_bounds = array<i64: 8, 32>}, {transform_indices = @transform_2, window_bounds = array<i64: 8, 32>}, {transform_indices = @transform_3, window_bounds = array<i64: 8, 32>}, {transform_indices = @transform_4, window_bounds = array<i64: 8, 1>}, {transform_indices = @transform_5, window_bounds = array<i64: 1, 8>}, {transform_indices = @transform_6, window_bounds = array<i64: 8, 1>}, {transform_indices = @transform_7, window_bounds = array<i64: 1, 8>}, {transform_indices = @transform_8, window_bounds = array<i64: 8, 1>}, {transform_indices = @transform_9, window_bounds = array<i64: 1, 8>}, {transform_indices = @transform_10, window_bounds = array<i64: 1, 8, 128>}]} {
    %c0_i32 = arith.constant 0 : i32
    %0 = arith.cmpi eq, %arg1, %c0_i32 : i32
    %1 = arith.extui %0 : i1 to i32
    %c0_i32_0 = arith.constant 0 : i32
    %2 = arith.cmpi ne, %1, %c0_i32_0 : i32
    scf.if %2 {
      %cst_19 = arith.constant 0.000000e+00 : f32
      %18 = vector.broadcast %cst_19 : f32 to vector<8x8xf32>
      %c0_20 = arith.constant 0 : index
      %c0_21 = arith.constant 0 : index
      %19 = vector.load %arg15[%c0_20, %c0_21] : memref<8x8xf32, #tpu.memory_space<vmem>>, vector<8x8xf32>
      tpu.vector_store %arg15[%c0_20, %c0_21], %18 {strides = array<i32>} : memref<8x8xf32, #tpu.memory_space<vmem>>, vector<8x8xf32>,
      %cst_22 = arith.constant 0.000000e+00 : f32
      %20 = vector.broadcast %cst_22 : f32 to vector<8x8xf32>
      %c0_23 = arith.constant 0 : index
      %c0_24 = arith.constant 0 : index
      %21 = vector.load %arg16[%c0_23, %c0_24] : memref<8x8xf32, #tpu.memory_space<vmem>>, vector<8x8xf32>
      tpu.vector_store %arg16[%c0_23, %c0_24], %20 {strides = array<i32>} : memref<8x8xf32, #tpu.memory_space<vmem>>, vector<8x8xf32>,
    } else {
    }
    %c0 = arith.constant 0 : index
    %c0_1 = arith.constant 0 : index
    %3 = vector.load %arg15[%c0, %c0_1] : memref<8x8xf32, #tpu.memory_space<vmem>>, vector<8x8xf32>
    %c0_2 = arith.constant 0 : index
    %c0_3 = arith.constant 0 : index
    %4 = vector.load %arg4[%c0_2, %c0_3] : memref<8x32xf32, #tpu.memory_space<vmem>>, vector<8x32xf32>
    %c0_4 = arith.constant 0 : index
    %c0_5 = arith.constant 0 : index
    %5 = vector.load %arg5[%c0_4, %c0_5] : memref<8x32xf32, #tpu.memory_space<vmem>>, vector<8x32xf32>
    %cst = arith.constant dense<0.000000e+00> : vector<8x8xf32>
    %6 = tpu.matmul %4, %5, %cst {dimension_numbers = #tpu.dot_dimension_numbers<[1], [1], [0], [0], [0, 0, 1, 0], [], []>} : vector<8x32xf32>, vector<8x32xf32>, vector<8x8xf32> -> vector<8x8xf32>
    %7 = arith.addf %3, %6 : vector<8x8xf32>
    %c0_6 = arith.constant 0 : index
    %c0_7 = arith.constant 0 : index
    %8 = vector.load %arg15[%c0_6, %c0_7] : memref<8x8xf32, #tpu.memory_space<vmem>>, vector<8x8xf32>
    tpu.vector_store %arg15[%c0_6, %c0_7], %7 {strides = array<i32>} : memref<8x8xf32, #tpu.memory_space<vmem>>, vector<8x8xf32>,
    %c0_8 = arith.constant 0 : index
    %c0_9 = arith.constant 0 : index
    %9 = vector.load %arg16[%c0_8, %c0_9] : memref<8x8xf32, #tpu.memory_space<vmem>>, vector<8x8xf32>
    %c0_10 = arith.constant 0 : index
    %c0_11 = arith.constant 0 : index
    %10 = vector.load %arg6[%c0_10, %c0_11] : memref<8x32xf32, #tpu.memory_space<vmem>>, vector<8x32xf32>
    %c0_12 = arith.constant 0 : index
    %c0_13 = arith.constant 0 : index
    %11 = vector.load %arg7[%c0_12, %c0_13] : memref<8x32xf32, #tpu.memory_space<vmem>>, vector<8x32xf32>
    %cst_14 = arith.constant dense<0.000000e+00> : vector<8x8xf32>
    %12 = tpu.matmul %10, %11, %cst_14 {dimension_numbers = #tpu.dot_dimension_numbers<[1], [1], [0], [0], [0, 0, 1, 0], [], []>} : vector<8x32xf32>, vector<8x32xf32>, vector<8x8xf32> -> vector<8x8xf32>
    %13 = arith.addf %9, %12 : vector<8x8xf32>
    %c0_15 = arith.constant 0 : index
    %c0_16 = arith.constant 0 : index
    %14 = vector.load %arg16[%c0_15, %c0_16] : memref<8x8xf32, #tpu.memory_space<vmem>>, vector<8x8xf32>
    tpu.vector_store %arg16[%c0_15, %c0_16], %13 {strides = array<i32>} : memref<8x8xf32, #tpu.memory_space<vmem>>, vector<8x8xf32>,
    %c0_i32_17 = arith.constant 0 : i32
    %15 = arith.cmpi eq, %arg1, %c0_i32_17 : i32
    %16 = arith.extui %15 : i1 to i32
    %c0_i32_18 = arith.constant 0 : i32
    %17 = arith.cmpi ne, %16, %c0_i32_18 : i32
    scf.if %17 {
      %18 = arith.index_cast %arg0 : i32 to index
      %19 = memref.load %arg2[%18] : memref<1xi32, #tpu.memory_space<smem>>
      %20 = arith.index_cast %arg0 : i32 to index
      %21 = memref.load %arg3[%20] : memref<1xi32, #tpu.memory_space<smem>>
      %22 = arith.cmpi eq, %19, %21 : i32
      %c0_19 = arith.constant 0 : index
      %c0_20 = arith.constant 0 : index
      %23 = vector.load %arg15[%c0_19, %c0_20] : memref<8x8xf32, #tpu.memory_space<vmem>>, vector<8x8xf32>
      %c0_21 = arith.constant 0 : index
      %c0_22 = arith.constant 0 : index
      %24 = vector.load %arg8[%c0_21, %c0_22] : memref<8x1xf32, #tpu.memory_space<vmem>>, vector<8x1xf32>
      %c0_23 = arith.constant 0 : index
      %c0_24 = arith.constant 0 : index
      %25 = vector.load %arg9[%c0_23, %c0_24] : memref<1x8xf32, #tpu.memory_space<vmem>>, vector<1x8xf32>
      %26 = vector.broadcast %24 : vector<8x1xf32> to vector<8x8xf32>
      %27 = arith.mulf %23, %26 : vector<8x8xf32>
      %28 = vector.broadcast %25 : vector<1x8xf32> to vector<8x8xf32>
      %29 = arith.mulf %27, %28 : vector<8x8xf32>
      %cst_25 = arith.constant 2.000000e+00 : f32
      %30 = vector.broadcast %cst_25 : f32 to vector<8x8xf32>
      %31 = arith.mulf %30, %29 : vector<8x8xf32>
      %cst_26 = arith.constant 2.000000e+00 : f32
      %32 = vector.broadcast %cst_26 : f32 to vector<8x8xf32>
      %33 = arith.subf %32, %31 : vector<8x8xf32>
      %cst_27 = arith.constant 0.000000e+00 : f32
      %34 = vector.broadcast %cst_27 : f32 to vector<8x8xf32>
      %35 = arith.maximumf %33, %34 : vector<8x8xf32>
      %cst_28 = arith.constant 9.99999996E-13 : f32
      %36 = vector.broadcast %cst_28 : f32 to vector<8x8xf32>
      %37 = arith.addf %35, %36 : vector<8x8xf32>
      %38 = math.sqrt %37 : vector<8x8xf32>
      %c0_29 = arith.constant 0 : index
      %c0_30 = arith.constant 0 : index
      %39 = vector.load %arg16[%c0_29, %c0_30] : memref<8x8xf32, #tpu.memory_space<vmem>>, vector<8x8xf32>
      %c0_31 = arith.constant 0 : index
      %c0_32 = arith.constant 0 : index
      %40 = vector.load %arg10[%c0_31, %c0_32] : memref<8x1xf32, #tpu.memory_space<vmem>>, vector<8x1xf32>
      %c0_33 = arith.constant 0 : index
      %c0_34 = arith.constant 0 : index
      %41 = vector.load %arg11[%c0_33, %c0_34] : memref<1x8xf32, #tpu.memory_space<vmem>>, vector<1x8xf32>
      %42 = vector.broadcast %40 : vector<8x1xf32> to vector<8x8xf32>
      %43 = arith.mulf %39, %42 : vector<8x8xf32>
      %44 = vector.broadcast %41 : vector<1x8xf32> to vector<8x8xf32>
      %45 = arith.mulf %43, %44 : vector<8x8xf32>
      %cst_35 = arith.constant 2.000000e+00 : f32
      %46 = vector.broadcast %cst_35 : f32 to vector<8x8xf32>
      %47 = arith.mulf %46, %45 : vector<8x8xf32>
      %cst_36 = arith.constant 2.000000e+00 : f32
      %48 = vector.broadcast %cst_36 : f32 to vector<8x8xf32>
      %49 = arith.subf %48, %47 : vector<8x8xf32>
      %cst_37 = arith.constant 0.000000e+00 : f32
      %50 = vector.broadcast %cst_37 : f32 to vector<8x8xf32>
      %51 = arith.maximumf %49, %50 : vector<8x8xf32>
      %cst_38 = arith.constant 9.99999996E-13 : f32
      %52 = vector.broadcast %cst_38 : f32 to vector<8x8xf32>
      %53 = arith.addf %51, %52 : vector<8x8xf32>
      %54 = math.sqrt %53 : vector<8x8xf32>
      %c0_39 = arith.constant 0 : index
      %c0_40 = arith.constant 0 : index
      %55 = vector.load %arg12[%c0_39, %c0_40] : memref<8x1xi32, #tpu.memory_space<vmem>>, vector<8x1xi32>
      %c0_41 = arith.constant 0 : index
      %c0_42 = arith.constant 0 : index
      %56 = vector.load %arg13[%c0_41, %c0_42] : memref<1x8xi32, #tpu.memory_space<vmem>>, vector<1x8xi32>
      %57 = vector.broadcast %55 : vector<8x1xi32> to vector<8x8xi32>
      %58 = vector.broadcast %56 : vector<1x8xi32> to vector<8x8xi32>
      %59 = arith.cmpi eq, %57, %58 : vector<8x8xi32>
      %60 = tpu.iota {dimensions = array<i32: 0>} : vector<8x8xi32>
      %61 = tpu.iota {dimensions = array<i32: 1>} : vector<8x8xi32>
      %62 = arith.cmpi eq, %60, %61 : vector<8x8xi32>
      %63 = vector.broadcast %22 : i1 to vector<8x8xi1>
      %64 = arith.andi %63, %62 : vector<8x8xi1>
      %cst_43 = arith.constant dense<true> : vector<8x8xi1>
      %65 = arith.xori %64, %cst_43 : vector<8x8xi1>
      %66 = arith.andi %59, %65 : vector<8x8xi1>
      %67 = arith.subf %38, %54 : vector<8x8xf32>
      %cst_44 = arith.constant 0.000000e+00 : f32
      %68 = vector.broadcast %cst_44 : f32 to vector<8x8xf32>
      %69 = arith.select %66, %67, %68 : vector<8x8xi1>, vector<8x8xf32>
      %70 = arith.mulf %69, %69 : vector<8x8xf32>
      %cst_45 = arith.constant 1.000000e+00 : f32
      %cst_46 = arith.constant 2.000000e+00 : f32
      %71 = arith.select %22, %cst_45, %cst_46 : f32
      %72 = vector.shape_cast %70 : vector<8x8xf32> to vector<1x8x8xf32>
      %cst_47 = arith.constant dense<0.000000e+00> : vector<1xf32>
      %73 = vector.multi_reduction <add>, %72, %cst_47 [1, 2] : vector<1x8x8xf32> to vector<1xf32>
      %74 = vector.shape_cast %73 : vector<1xf32> to vector<1x1x1xf32>
      %75 = vector.extract %74[0, 0, 0] : f32 from vector<1x1x1xf32>
      %76 = arith.mulf %75, %71 : f32
      %77 = tpu.iota {dimensions = array<i32: 0>} : vector<8x128xi32>
      %78 = tpu.iota {dimensions = array<i32: 1>} : vector<8x128xi32>
      %c0_i32_48 = arith.constant 0 : i32
      %79 = vector.broadcast %c0_i32_48 : i32 to vector<8x128xi32>
      %80 = arith.cmpi eq, %77, %79 : vector<8x128xi32>
      %c0_i32_49 = arith.constant 0 : i32
      %81 = vector.broadcast %c0_i32_49 : i32 to vector<8x128xi32>
      %82 = arith.cmpi eq, %78, %81 : vector<8x128xi32>
      %83 = arith.andi %80, %82 : vector<8x128xi1>
      %cst_50 = arith.constant 0.000000e+00 : f32
      %84 = vector.broadcast %76 : f32 to vector<8x128xf32>
      %85 = vector.broadcast %cst_50 : f32 to vector<8x128xf32>
      %86 = arith.select %83, %84, %85 : vector<8x128xi1>, vector<8x128xf32>
      %c0_51 = arith.constant 0 : index
      %c0_52 = arith.constant 0 : index
      %c0_53 = arith.constant 0 : index
      %87 = vector.load %arg14[%c0_51, %c0_52, %c0_53] : memref<1x8x128xf32, #tpu.memory_space<vmem>>, vector<1x8x128xf32>
      %88 = vector.shape_cast %87 : vector<1x8x128xf32> to vector<8x128xf32>
      %89 = vector.shape_cast %86 : vector<8x128xf32> to vector<1x8x128xf32>
      tpu.vector_store %arg14[%c0_51, %c0_52, %c0_53], %89 {strides = array<i32>} : memref<1x8x128xf32, #tpu.memory_space<vmem>>, vector<1x8x128xf32>,
    } else {
    }
    return
  }
  func.func @transform_0(%arg0: i32, %arg1: i32, %arg2: memref<1xi32, #tpu.memory_space<smem>>, %arg3: memref<1xi32, #tpu.memory_space<smem>>) -> (i32, i32) {
    %0 = arith.index_cast %arg0 : i32 to index
    %1 = memref.load %arg2[%0] : memref<1xi32, #tpu.memory_space<smem>>
    %c0_i32 = arith.constant 0 : i32
    return %1, %arg1 : i32, i32
  }
  func.func @transform_1(%arg0: i32, %arg1: i32, %arg2: memref<1xi32, #tpu.memory_space<smem>>, %arg3: memref<1xi32, #tpu.memory_space<smem>>) -> (i32, i32) {
    %0 = arith.index_cast %arg0 : i32 to index
    %1 = memref.load %arg3[%0] : memref<1xi32, #tpu.memory_space<smem>>
    %c0_i32 = arith.constant 0 : i32
    return %1, %arg1 : i32, i32
  }
  func.func @transform_2(%arg0: i32, %arg1: i32, %arg2: memref<1xi32, #tpu.memory_space<smem>>, %arg3: memref<1xi32, #tpu.memory_space<smem>>) -> (i32, i32) {
    %0 = arith.index_cast %arg0 : i32 to index
    %1 = memref.load %arg2[%0] : memref<1xi32, #tpu.memory_space<smem>>
    %c0_i32 = arith.constant 0 : i32
    return %1, %arg1 : i32, i32
  }
  func.func @transform_3(%arg0: i32, %arg1: i32, %arg2: memref<1xi32, #tpu.memory_space<smem>>, %arg3: memref<1xi32, #tpu.memory_space<smem>>) -> (i32, i32) {
    %0 = arith.index_cast %arg0 : i32 to index
    %1 = memref.load %arg3[%0] : memref<1xi32, #tpu.memory_space<smem>>
    %c0_i32 = arith.constant 0 : i32
    return %1, %arg1 : i32, i32
  }
  func.func @transform_4(%arg0: i32, %arg1: i32, %arg2: memref<1xi32, #tpu.memory_space<smem>>, %arg3: memref<1xi32, #tpu.memory_space<smem>>) -> (i32, i32) {
    %0 = arith.index_cast %arg0 : i32 to index
    %1 = memref.load %arg2[%0] : memref<1xi32, #tpu.memory_space<smem>>
    %c0_i32 = arith.constant 0 : i32
    %c0_i32_0 = arith.constant 0 : i32
    return %1, %c0_i32 : i32, i32
  }
  func.func @transform_5(%arg0: i32, %arg1: i32, %arg2: memref<1xi32, #tpu.memory_space<smem>>, %arg3: memref<1xi32, #tpu.memory_space<smem>>) -> (i32, i32) {
    %0 = arith.index_cast %arg0 : i32 to index
    %1 = memref.load %arg3[%0] : memref<1xi32, #tpu.memory_space<smem>>
    %c0_i32 = arith.constant 0 : i32
    %c0_i32_0 = arith.constant 0 : i32
    return %c0_i32, %1 : i32, i32
  }
  func.func @transform_6(%arg0: i32, %arg1: i32, %arg2: memref<1xi32, #tpu.memory_space<smem>>, %arg3: memref<1xi32, #tpu.memory_space<smem>>) -> (i32, i32) {
    %0 = arith.index_cast %arg0 : i32 to index
    %1 = memref.load %arg2[%0] : memref<1xi32, #tpu.memory_space<smem>>
    %c0_i32 = arith.constant 0 : i32
    %c0_i32_0 = arith.constant 0 : i32
    return %1, %c0_i32 : i32, i32
  }
  func.func @transform_7(%arg0: i32, %arg1: i32, %arg2: memref<1xi32, #tpu.memory_space<smem>>, %arg3: memref<1xi32, #tpu.memory_space<smem>>) -> (i32, i32) {
    %0 = arith.index_cast %arg0 : i32 to index
    %1 = memref.load %arg3[%0] : memref<1xi32, #tpu.memory_space<smem>>
    %c0_i32 = arith.constant 0 : i32
    %c0_i32_0 = arith.constant 0 : i32
    return %c0_i32, %1 : i32, i32
  }
  func.func @transform_8(%arg0: i32, %arg1: i32, %arg2: memref<1xi32, #tpu.memory_space<smem>>, %arg3: memref<1xi32, #tpu.memory_space<smem>>) -> (i32, i32) {
    %0 = arith.index_cast %arg0 : i32 to index
    %1 = memref.load %arg2[%0] : memref<1xi32, #tpu.memory_space<smem>>
    %c0_i32 = arith.constant 0 : i32
    %c0_i32_0 = arith.constant 0 : i32
    return %1, %c0_i32 : i32, i32
  }
  func.func @transform_9(%arg0: i32, %arg1: i32, %arg2: memref<1xi32, #tpu.memory_space<smem>>, %arg3: memref<1xi32, #tpu.memory_space<smem>>) -> (i32, i32) {
    %0 = arith.index_cast %arg0 : i32 to index
    %1 = memref.load %arg3[%0] : memref<1xi32, #tpu.memory_space<smem>>
    %c0_i32 = arith.constant 0 : i32
    %c0_i32_0 = arith.constant 0 : i32
    return %c0_i32, %1 : i32, i32
  }
  func.func @transform_10(%arg0: i32, %arg1: i32, %arg2: memref<1xi32, #tpu.memory_space<smem>>, %arg3: memref<1xi32, #tpu.memory_space<smem>>) -> (i32, i32, i32) {
    %c0_i32 = arith.constant 0 : i32
    %c0_i32_0 = arith.constant 0 : i32
    %c0_i32_1 = arith.constant 0 : i32
    return %arg0, %c0_i32, %c0_i32_0 : i32, i32, i32
  }
}

</mosaic_0001>

<bundles_post_ra>
// kernel: tpu_custom_call.1
= control target key start
LH: loop header
LB: loop body
LE: loop exit
PB: predicated region body
PF: predicated region fallthrough
CT: control target
= control target key end

     0   :  { %v604_v0 = vmov 0.0   ;;  %vm205_vm0 = vcmask 64512   ;;  %s763_s0 = inlined_call_operand.<no memory space> [shape: s32[1], index: 0, kind: input, shape index: {}]   ;;  %s764_s1 = inlined_call_operand.<no memory space> [shape: s32[1], index: 1, kind: input, shape index: {}]   ;;  %s765_s2 = inlined_call_operand.vmem [shape: f32[8,32], index: 2, kind: input, shape index: {}]   ;;  %s766_s3 = inlined_call_operand.vmem [shape: f32[8,32], index: 3, kind: input, shape index: {}]   ;;  %s767_s4 = inlined_call_operand.vmem [shape: f32[8,32], index: 4, kind: input, shape index: {}]   ;;  %s768_s5 = inlined_call_operand.vmem [shape: f32[8,32], index: 5, kind: input, shape index: {}]   ;;  %s769_s6 = inlined_call_operand.vmem [shape: f32[8,1], index: 6, kind: input, shape index: {}]   ;;  %s770_s7 = inlined_call_operand.vmem [shape: f32[1,8], index: 7, kind: input, shape index: {}]   ;;  %s771_s8 = inlined_call_operand.vmem [shape: f32[8,1], index: 8, kind: input, shape index: {}]   ;;  %s772_s9 = inlined_call_operand.vmem [shape: f32[1,8], index: 9, kind: input, shape index: {}]   ;;  %s773_s10 = inlined_call_operand.vmem [shape: s32[8,1], index: 10, kind: input, shape index: {}]   ;;  %s774_s11 = inlined_call_operand.vmem [shape: s32[1,8], index: 11, kind: input, shape index: {}]   ;;  %s775_s12 = inlined_call_operand.hbm [shape: f32[1,8,128], index: 12, kind: output, shape index: {}]  }
   0x1   :  { %p151_p0 = scmp.lt.s32.totalorder %s764_s1, 0  ;;  %p145_p1 = scmp.lt.s32.totalorder %s763_s0, 0  ;;  %557 = vmatprep.subr.mxu0 %v604_v0  ;;  %562 = vmatprep.subr.mxu1 %v604_v0 }
   0x2   :  { %19 = vsyncpa [#allocation8], 0  ;;  %vm605_vm1 = vmmov 0   ;;  %206 = vst.msk [vmem:[#allocation2] sm:$0xff] %vm205_vm0, %v604_v0  ;;  %v606_v1 = vmov 0   ;;  %vm211_vm2 = vcmask 261120   ;;  %p377_p2 = scmp.eq.s32.totalorder %s763_s0, %s764_s1  ;;  %v442_v35 = vlaneseq }
   0x3   :  { %s683_s27 = scalar_select %p151_p0, %s764_s1, 0  ;;  %559 = vmatprep.mubr.msk.f32.mxu0 %vm605_vm1, %v604_v0  ;;  %564 = vmatprep.mubr.msk.f32.mxu1 %vm605_vm1, %v604_v0  ;;  %207 = vst.msk [vmem:[#allocation3] sm:$0xff] %vm205_vm0, %v604_v0  ;;  %vm607_vm6 = vmmov 1  }
   0x4   :  { %s146_s30 = scalar_select %p145_p1, %s763_s0, 0  ;;  %574 = vset.pattern.permute.xlu0 %v606_v1  ;;  %575 = vset.pattern.permute.xlu1 %v606_v1  ;;  %v443_v36 = vshrl.u32 %v442_v35, 7  ;;  %v445_v37 = vand.u32 127, %v442_v35 }
   0x5   :  { %s540_s13 = sshll.u32 %s683_s27, 3  ;;  %s188_s17 = scalar_lea.vmem %s772_s9, %s683_s27 }
   0x6   :  { %s154_s16 = scalar_lea.vmem %s766_s3, %s540_s13  ;;  %s166_s19 = scalar_lea.vmem %s768_s5, %s540_s13  ;;  %v551_v20 = vld [vmem:[%s188_s17] ss:$0 sm:$0xff]  ;;  %vm446_vm3 = vcmp.eq.s32.totalorder %v443_v36, %v445_v37  ;;  %vm468_vm14 = vcmp.eq.s32.totalorder %v443_v36, 0  ;;  %vm469_vm15 = vcmp.eq.s32.totalorder %v445_v37, 0 }
   0x7   :  { %v210_v2 = vld [vmem:[%s154_s16] sm:$0xff]  ;;  %s539_s20 = sshll.u32 %s146_s30, 3  ;;  %s199_s3 = scalar_lea.vmem %s774_s11, %s683_s27 }
   0x8   :  { %v293_v3 = vld [vmem:[%s166_s19] sm:$0xff]  ;;  %558 = vmatpush3.xpose.msk.msra.mxu0 %vm211_vm2, %v210_v2  ;;  %s148_s23 = scalar_lea.vmem %s765_s2, %s539_s20  ;;  %s160_s26 = scalar_lea.vmem %s767_s4, %s539_s20 }
   0x9   :  { %563 = vmatpush3.xpose.msk.msra.mxu1 %vm211_vm2, %v293_v3  ;;  %v209_v4 = vld [vmem:[%s148_s23] sm:$0xff]  ;;  %s172_s5 = scalar_lea.vmem %s769_s6, %s539_s20  ;;  %s183_s13 = scalar_lea.vmem %s771_s8, %s539_s20 }
   0xa   :  { %v292_v5 = vld [vmem:[%s160_s26] sm:$0xff]  ;;  %s194_s16 = scalar_lea.vmem %s773_s10, %s539_s20  ;;  %v291_v10 = vld [vmem:[#allocation3] sm:$0xff]  ;;  %s177_s6 = scalar_lea.vmem %s770_s7, %s683_s27 }
   0xb   :  { %v379_v6 = vld [vmem:[%s172_s5] sm:$0xff]  ;;  %560 = vmatmul.mubr.msk.f32.vlgmr.msra.gmra.mrb[0].mxu0 %vm211_vm2, %v209_v4  ;;  %s447_s24 = scalar_select %p377_p2, 1, 0 }
   0xc   :  { %565 = vmatmul.mubr.msk.f32.vlgmr.msra.gmra.mrb[0].mxu1 %vm211_vm2, %v292_v5  ;;  %v432_v7 = vld [vmem:[%s194_s16] sm:$0xff]  ;;  %383 = vperm.xlu0 %574, %v379_v6   ;;  %s456_s29 = scalar_select %p377_p2, 1.0, 2.0 }
   0xd   :  { %435 = vperm.xlu1 %575, %v432_v7   ;;  %v406_v8 = vld [vmem:[%s183_s13] sm:$0xff]  ;;  %v448_v38 = vstv %s447_s24  ;;  %s608_s13 = smov [#allocation7]  }
   0xe   :  { %v208_v9 = vld [vmem:[#allocation2] sm:$0xff]  ;;  %vm449_vm4 = vcmp.eq.s32.totalorder %v448_v38, 1  ;;  %s480_s14 = sshll.u32 %s608_s13, 4  ;;  %s481_s14 = int_to_ptr.vmem [resolvable:$true] %s480_s14 }
   0xf   :  { %v550_v18 = vld [vmem:[%s177_s6] ss:$0 sm:$0xff]  ;;  %vm450_vm5 = vmand %vm449_vm4, %vm446_vm3  ;;  %s580_s16 = scalar_lea.vmem %s481_s14, 128  ;;  %p585_p4 = scmp.lt.s32.totalorder %s481_s14, %s481_s14 }
  0x10   :  { %410 = vperm.xlu0 %574, %v406_v8   ;;  %v552_v39 = vld [vmem:[%s199_s3] ss:$0 sm:$0xff]  ;;  %vm451_vm7 = vmxor %vm450_vm5, %vm607_vm6  ;;  %p581_p3 = scmp.ne.s32.totalorder %s481_s14, %s580_s16  ;;  %p586_p5 = scmp.lt.s32.totalorder %s580_s16, %s580_s16 }
  0x12   :  { %p587_p6 = por %p586_p5, %p585_p4 }
  0x14   :  { %p588_p7 = pnand %p587_p6, %p581_p3 }
  0x8b   :  { %v384_v17 = vpop.permute.xlu0 %383 }
  0x8c   :  { %v436_v40 = vpop.permute.xlu1 %435 }
  0x8d   :  { %vm441_vm9 = vcmp.eq.s32.totalorder %v436_v40, %v552_v39 }
  0x8e   :  { %vm452_vm13 = vmand %vm441_vm9, %vm451_vm7 }
  0x8f   :  { %v411_v21 = vpop.permute.xlu0 %410 }
  0xde   :  { %v284_v11 = vpop.f32.mrb[0].mxu0 }
  0xdf   :  { %v366_v12 = vpop.f32.mrb[0].mxu1  ;;  %v288_v13 = vadd.f32 %v284_v11, %v208_v9  ;;  %v561_v15 = vpop.f32.mrb[1].mxu0 }
  0xe0   :  { %v370_v14 = vadd.f32 %v366_v12, %v291_v10  ;;  %v566_v16 = vpop.f32.mrb[1].mxu1 }
  0xe1   :  { %290 = vst.msk [vmem:[#allocation2] sm:$0xff] %vm205_vm0, %v288_v13 }
  0xe2   :  { %371 = vst.msk [vmem:[#allocation3] sm:$0xff] %vm205_vm0, %v370_v14 }
  0xe8   :  { %v378_v19 = vld [vmem:[#allocation2] sm:$0xff] }
  0xe9   :  { %v405_v22 = vld [vmem:[#allocation3] sm:$0xff]  ;;  %v386_v23 = vmul.f32 %v384_v17, %v378_v19 }
  0xea   :  { %v413_v24 = vmul.f32 %v411_v21, %v405_v22 }
  0xeb   :  { %v393_v25 = vmul.f32 %v550_v18, %v386_v23 }
  0xec   :  { %v420_v26 = vmul.f32 %v551_v20, %v413_v24 }
  0xed   :  { %v394_v27 = vmul.f32 2.0, %v393_v25 }
  0xee   :  { %v421_v28 = vmul.f32 2.0, %v420_v26 }
  0xef   :  { %v395_v29 = vsub.f32 2.0, %v394_v27 }
  0xf0   :  { %v422_v30 = vsub.f32 2.0, %v421_v28 }
  0xf1   :  { %v396_v31 = vmax.f32 %v395_v29, 0.0 }
  0xf2   :  { %v423_v32 = vmax.f32 %v422_v30, 0.0 }
  0xf3   :  { %v397_v33 = vadd.f32 1e-12, %v396_v31 }
  0xf4   :  { %v424_v34 = vadd.f32 1e-12, %v423_v32 }
  0xf5   :  { %576 = vrsqrt.f32 %v397_v33  ;;  %vm400_vm8 = vcmp.eq.f32.partialorder %v397_v33, inf  ;;  %v403_v44 = vand.u32 2147483648, %v397_v33  ;;  %vm402_vm10 = vcmp.eq.f32.partialorder %v397_v33, 0.0 }
  0xf6   :  { %578 = vrsqrt.f32 %v424_v34  ;;  %vm427_vm11 = vcmp.eq.f32.partialorder %v424_v34, inf  ;;  %v430_v47 = vand.u32 2147483648, %v424_v34  ;;  %vm429_vm12 = vcmp.eq.f32.partialorder %v424_v34, 0.0 }
  0xff   :  { %v577_v41 = vpop.eup %576 }
 0x100   :  { %v579_v42 = vpop.eup %578  ;;  %v399_v43 = vmul.f32 %v577_v41, %v397_v33 }
 0x101   :  { %v426_v45 = vmul.f32 %v579_v42, %v424_v34 }
 0x102   :  { %v401_v46 = vsel %vm400_vm8, %v397_v33, %v399_v43 }
 0x103   :  { %v404_v48 = vsel %vm402_vm10, %v403_v44, %v401_v46  ;;  %v428_v49 = vsel %vm427_vm11, %v424_v34, %v426_v45 }
 0x104   :  { %v431_v50 = vsel %vm429_vm12, %v430_v47, %v428_v49 }
 0x105   :  { %v453_v51 = vsub.f32 %v404_v48, %v431_v50 }
 0x107   :  { %v454_v52 = vsel %vm452_vm13, %v453_v51, 0.0 }
 0x108   :  { %v455_v53 = vmul.f32 %v454_v52, %v454_v52 }
 0x10a   :  { %v457_v54 = vsel %vm205_vm0, %v455_v53, 0.0  ;;  %vm470_vm0 = vmand %vm468_vm14, %vm469_vm15 }
 0x10b   :  { %458 = vadd.xlane.f32.xlu1 %v457_v54 }
 0x198   :  { %v459_v55 = vpop.xlane.xlu1 %458 }
 0x199   :  { %v460_v56 = vrot.slane %v459_v55, 4 }
 0x19b   :  { %v461_v57 = vadd.f32 %v460_v56, %v459_v55 }
 0x19d   :  { %v462_v58 = vrot.slane %v461_v57, 2 }
 0x19f   :  { %v463_v59 = vadd.f32 %v462_v58, %v461_v57 }
 0x1a1   :  { %v464_v60 = vrot.slane %v463_v59, 1 }
 0x1a3   :  { %v465_v61 = vadd.f32 %v464_v60, %v463_v59 }
 0x1a5   :  { %567 = vpush %v465_v61 }
 0x1d6   :  { %s568_s30 = spop %567 }
 0x1d7   :  { %s467_s15 = smul.f32 %s568_s30, %s456_s29 }
 0x1d9   :  { %v471_v62 = vstv %s467_s15 }
 0x1da   :  { %v472_v63 = vsel %vm470_vm0, %v471_v62, 0.0 }
 0x1db   :  { %473 = vst [vmem:[#allocation7] sm:$0xff] %v472_v63 }
 0x1dc   :  { %591 = shalt.err (!%p588_p7)
}
 0x1dd   :  { %s592_s2 = scalar_lea.hbm %s775_s12, 128 }
 0x1de   :  { %p593_p8 = scmp.ne.s32.totalorder %s775_s12, %s592_s2  ;;  %p596_p9 = scmp.lt.u32.totalorder %s592_s2, %s775_s12 }
 0x1e0   :  { %p598_p10 = pnand %p596_p9, %p593_p8 }
 0x1e2   :  { %601 = shalt.err (!%p598_p10)
}
 0x1e3   :  { %483 = dma.vmem_to_hbm [thread:$0]  %s481_s14, 128, %s775_s12, [#allocation8]  }
 0x1e4   :  { %602 = dma.done.wait [#allocation8], 128  }
 0x1e5   :  { %603 = vsyncadd [#allocation8], 4294967168 }
 0x1e6   :  { %487 = vsyncpa [#allocation8], 1 }

</bundles_post_ra>
